<compile_context>
chip_gen: v7x
topology: tpu7x:2x2x1
jax: 0.10.0
libtpu: 0.0.40
codegen_flags: <defaults>
</compile_context>

<pallas_src>
import math
import numpy as np
import jax
import jax.numpy as jnp
from jax.experimental import pallas as pl
from jax.experimental.pallas import tpu as pltpu


def _round_up(a, b):
    return (a + b - 1) // b * b


# ---------------------------------------------------------------- glue (JAX)
def make_quaternion_mul(kernel):
    """JAX port of the PyTorch helper: kernel (in//4, out) -> hamilton (in, out)."""
    r, i, j, k = jnp.split(kernel, 4, axis=1)
    r2 = jnp.concatenate([r, -i, -j, -k], axis=0)
    i2 = jnp.concatenate([i, r, -k, j], axis=0)
    j2 = jnp.concatenate([j, k, r, -i], axis=0)
    k2 = jnp.concatenate([k, -j, i, r], axis=0)
    hamilton = jnp.concatenate([r2, i2, j2, k2], axis=1)
    assert kernel.shape[1] == hamilton.shape[1]
    return hamilton


# ---------------------------------------------------- kernel 1: x @ hamilton
def support_kernel(x_ref, h_ref, s_ref):
    s_ref[...] = jnp.dot(
        x_ref[...], h_ref[...], preferred_element_type=jnp.float32
    ).astype(s_ref.dtype)


# ------------------------------------------ kernel 2: relu(adj @ support)
def aggregate_kernel(adj_ref, s_ref, o_ref, acc_ref):
    @pl.when(pl.program_id(1) == 0)
    def _():
        acc_ref[...] = jnp.zeros_like(acc_ref)

    acc_ref[...] += jnp.dot(
        adj_ref[...], s_ref[...], preferred_element_type=jnp.float32
    )

    @pl.when(pl.program_id(1) == pl.num_programs(1) - 1)
    def _():
        # ReLU on the f32 accumulator, then cast (v5e has no bf16 VPU).
        o_ref[...] = jnp.maximum(acc_ref[...], 0.0).astype(o_ref.dtype)


# ------------------------------------------------------------------ wrapper
def qgnn_layer(x, adj, weight, *, quaternion_ff=True, tm=256, tk=512):
    """Pallas forward of QGNNLayer (inference: dropout is identity)."""
    N, in_f = x.shape
    out_f = weight.shape[1]

    ff = make_quaternion_mul(weight) if quaternion_ff else weight
    assert ff.shape == (in_f, out_f)

    dt = x.dtype
    itemsize = jnp.dtype(dt).itemsize

    # Lane/sublane friendly padded sizes (128-lane dense stores, 8-row tiles).
    in_fp = _round_up(in_f, 128)
    out_fp = _round_up(out_f, 128)
    tm = min(tm, _round_up(N, 8))       # output / adj row tile
    tk = min(tk, _round_up(N, 128))     # adj column (K) tile
    n_rows = _round_up(N, tm)           # padded M
    n_cols = _round_up(N, tk)           # padded K (adj cols == support rows)
    tms = tk                            # row tile for the support kernel

    # Zero-pad (zeros contribute nothing to either matmul; sliced off at end).
    x_p = jnp.zeros((n_cols, in_fp), dt).at[:N, :in_f].set(x)
    ff_p = jnp.zeros((in_fp, out_fp), dt).at[:in_f, :out_f].set(ff.astype(dt))
    adj_p = jnp.zeros((n_rows, n_cols), dt).at[:N, :N].set(adj)

    # ---- kernel 1: support = x @ hamilton ---------------------------------
    cost1 = pl.CostEstimate(
        flops=2 * n_cols * in_fp * out_fp,
        transcendentals=0,
        bytes_accessed=(n_cols * in_fp + in_fp * out_fp + n_cols * out_fp) * itemsize,
    )
    support = pl.pallas_call(
        support_kernel,
        out_shape=jax.ShapeDtypeStruct((n_cols, out_fp), dt),
        grid_spec=pltpu.PrefetchScalarGridSpec(
            num_scalar_prefetch=0,
            grid=(n_cols // tms,),
            in_specs=[
                pl.BlockSpec((tms, in_fp), lambda i: (i, 0)),   # x row tile
                pl.BlockSpec((in_fp, out_fp), lambda i: (0, 0)),  # hamilton (small, full)
            ],
            out_specs=pl.BlockSpec((tms, out_fp), lambda i: (i, 0)),
        ),
        compiler_params=pltpu.CompilerParams(
            dimension_semantics=("parallel",)
        ),
        cost_estimate=cost1,
    )(x_p, ff_p)

    # ---- kernel 2: out = relu(adj @ support), K-tiled accumulation --------
    cost2 = pl.CostEstimate(
        flops=2 * n_rows * n_cols * out_fp,
        transcendentals=0,
        bytes_accessed=(n_rows * n_cols + n_cols * out_fp + n_rows * out_fp) * itemsize,
    )
    out_p = pl.pallas_call(
        aggregate_kernel,
        out_shape=jax.ShapeDtypeStruct((n_rows, out_fp), dt),
        grid_spec=pltpu.PrefetchScalarGridSpec(
            num_scalar_prefetch=0,
            grid=(n_rows // tm, n_cols // tk),
            in_specs=[
                pl.BlockSpec((tm, tk), lambda i, k: (i, k)),      # adj tile
                pl.BlockSpec((tk, out_fp), lambda i, k: (k, 0)),  # support K tile
            ],
            out_specs=pl.BlockSpec((tm, out_fp), lambda i, k: (i, 0)),
            scratch_shapes=[pltpu.VMEM((tm, out_fp), jnp.float32)],
        ),
        compiler_params=pltpu.CompilerParams(
            dimension_semantics=("parallel", "arbitrary")
        ),
        cost_estimate=cost2,
    )(adj_p, support)

    return out_p[:N, :out_f]


# ---------------------------------------------------------------- reference
def qgnn_reference(x, adj, weight):
    hamilton = make_quaternion_mul(weight)
    support = x @ hamilton
    return jnp.maximum(adj @ support, 0.0)


if __name__ == "__main__":
    # Small shapes consistent with the module: N nodes, quaternion features.
    N = 50              # number of graph nodes (intentionally ragged)
    in_features = 32    # must be divisible by 4
    out_features = 32   # must be divisible by 4
    # Note: nn.Dropout is identity at inference; self.bn (BatchNorm1d) is
    # constructed in __init__ but never used in forward().

    key = jax.random.PRNGKey(0)
    kx, ka, kw = jax.random.split(key, 3)

    # Deterministic parameter init matching reset_parameters():
    #   weight (in//4, out) ~ U(-stdv, stdv), stdv = sqrt(6/(in//4 + out))
    stdv = math.sqrt(6.0 / (in_features // 4 + out_features))
    weight = jax.random.uniform(
        kw, (in_features // 4, out_features),
        minval=-stdv, maxval=stdv, dtype=jnp.float32,
    )

    x = jax.random.normal(kx, (N, in_features), dtype=jnp.float32)

    # Dense, row-normalized "adjacency" standing in for the sparse adj of spmm.
    adj_raw = jax.random.uniform(ka, (N, N), dtype=jnp.float32)
    adj = adj_raw / jnp.sum(adj_raw, axis=1, keepdims=True)

    out = qgnn_layer(x, adj, weight)
    out = jax.block_until_ready(out)

    ref = qgnn_reference(x, adj, weight)
    np.testing.assert_allclose(np.asarray(out), np.asarray(ref),
                               rtol=1e-5, atol=1e-5)

    print("KERNEL_OK")
</pallas_src>

<mosaic_0001>
module attributes {stable_mosaic.version = 11 : i64} {
  func.func @support_kernel(%arg0: i32, %arg1: memref<128x128xf32, #tpu.memory_space<vmem>>, %arg2: memref<128x128xf32, #tpu.memory_space<vmem>>, %arg3: memref<128x128xf32, #tpu.memory_space<vmem>>) attributes {dimension_semantics = [#tpu.dimension_semantics<parallel>], iteration_bounds = array<i64: 1>, scalar_prefetch = 0 : i64, scratch_operands = 0 : i64, tpu.core_type = #tpu.core_type<tc>, window_params = [{transform_indices = @transform_0, window_bounds = array<i64: 128, 128>}, {pipeline_mode = #tpu.pipeline_mode<synchronous>, transform_indices = @transform_1, window_bounds = array<i64: 128, 128>}, {transform_indices = @transform_2, window_bounds = array<i64: 128, 128>}]} {
    %c0 = arith.constant 0 : index
    %c0_0 = arith.constant 0 : index
    %0 = vector.load %arg1[%c0, %c0_0] : memref<128x128xf32, #tpu.memory_space<vmem>>, vector<128x128xf32>
    %c0_1 = arith.constant 0 : index
    %c0_2 = arith.constant 0 : index
    %1 = vector.load %arg2[%c0_1, %c0_2] : memref<128x128xf32, #tpu.memory_space<vmem>>, vector<128x128xf32>
    %cst = arith.constant dense<0.000000e+00> : vector<128x128xf32>
    %2 = tpu.matmul %0, %1, %cst {dimension_numbers = #tpu.dot_dimension_numbers<[1], [0], [0], [1], [0, 0, 1, 1], [], []>} : vector<128x128xf32>, vector<128x128xf32>, vector<128x128xf32> -> vector<128x128xf32>
    %c0_3 = arith.constant 0 : index
    %c0_4 = arith.constant 0 : index
    %3 = vector.load %arg3[%c0_3, %c0_4] : memref<128x128xf32, #tpu.memory_space<vmem>>, vector<128x128xf32>
    tpu.vector_store %arg3[%c0_3, %c0_4], %2 {strides = array<i32>} : memref<128x128xf32, #tpu.memory_space<vmem>>, vector<128x128xf32>,
    return
  }
  func.func @transform_0(%arg0: i32) -> (i32, i32) {
    %c0_i32 = arith.constant 0 : i32
    %c0_i32_0 = arith.constant 0 : i32
    return %arg0, %c0_i32 : i32, i32
  }
  func.func @transform_1(%arg0: i32) -> (i32, i32) {
    %c0_i32 = arith.constant 0 : i32
    %c0_i32_0 = arith.constant 0 : i32
    %c0_i32_1 = arith.constant 0 : i32
    return %c0_i32, %c0_i32_0 : i32, i32
  }
  func.func @transform_2(%arg0: i32) -> (i32, i32) {
    %c0_i32 = arith.constant 0 : i32
    %c0_i32_0 = arith.constant 0 : i32
    return %arg0, %c0_i32 : i32, i32
  }
}

</mosaic_0001>

<bundles_post_ra>
// kernel: tpu_custom_call.1
= control target key start
LH: loop header
LB: loop body
LE: loop exit
PB: predicated region body
PF: predicated region fallthrough
CT: control target
= control target key end

     0   :  { %7 = vsyncpa [#allocation3], 0  ;;  %s529_s0 = inlined_call_operand.hbm [shape: f32[128,128], index: 0, kind: input, shape index: {}]   ;;  %s530_s1 = inlined_call_operand.hbm [shape: f32[128,128], index: 1, kind: input, shape index: {}]   ;;  %s531_s2 = inlined_call_operand.hbm [shape: f32[128,128], index: 2, kind: output, shape index: {}]  }
   0x1   :  { %8 = vsyncpa [#allocation6], 0 }
   0x2   :  { %9 = vsyncpa [#allocation4], 0  ;;  %s464_s9 = smov [#allocation2]   ;;  %s392_s13 = scalar_lea.hbm %s529_s0, 2048 }
   0x3   :  { %s15_s10 = sshll.u32 %s464_s9, 4  ;;  %p393_p0 = scmp.ne.s32.totalorder %s529_s0, %s392_s13  ;;  %s16_s10 = int_to_ptr.vmem [resolvable:$true] %s15_s10 }
   0x4   :  { %p396_p1 = scmp.lt.u32.totalorder %s392_s13, %s529_s0 }
   0x6   :  { %p398_p2 = pnand %p396_p1, %p393_p0 }
   0x8   :  { %401 = shalt.err (!%p398_p2)
}
   0x9   :  { %s402_s18 = scalar_lea.vmem %s16_s10, 2048  ;;  %p407_p4 = scmp.lt.s32.totalorder %s16_s10, %s16_s10 }
   0xa   :  { %p403_p3 = scmp.ne.s32.totalorder %s16_s10, %s402_s18  ;;  %p408_p5 = scmp.lt.s32.totalorder %s402_s18, %s402_s18 }
   0xc   :  { %p409_p6 = por %p408_p5, %p407_p4 }
   0xe   :  { %p410_p7 = pnand %p409_p6, %p403_p3 }
  0x10   :  { %413 = shalt.err (!%p410_p7)
}
  0x11   :  { %s465_s19 = smov 128   ;;  %s466_s20 = smov 8  }
  0x12   :  { %21 = dma.hbm_to_vmem [thread:$0]  %s529_s0, 2048, %s16_s10, [#allocation3], %s465_s19, %s465_s19, %s466_s20  }
  0x13   :  { %s467_s23 = smov [#allocation5]   ;;  %s414_s27 = scalar_lea.hbm %s530_s1, 2048 }
  0x14   :  { %s27_s24 = sshll.u32 %s467_s23, 4  ;;  %p415_p8 = scmp.ne.s32.totalorder %s530_s1, %s414_s27  ;;  %s28_s24 = int_to_ptr.vmem [resolvable:$true] %s27_s24 }
  0x15   :  { %p418_p9 = scmp.lt.u32.totalorder %s414_s27, %s530_s1 }
  0x17   :  { %p420_p10 = pnand %p418_p9, %p415_p8 }
  0x19   :  { %423 = shalt.err (!%p420_p10)
}
  0x1a   :  { %s424_s4 = scalar_lea.vmem %s28_s24, 2048  ;;  %p429_p12 = scmp.lt.s32.totalorder %s28_s24, %s28_s24 }
  0x1b   :  { %p425_p11 = scmp.ne.s32.totalorder %s28_s24, %s424_s4  ;;  %p430_p13 = scmp.lt.s32.totalorder %s424_s4, %s424_s4 }
  0x1d   :  { %p431_p0 = por %p430_p13, %p429_p12 }
  0x1f   :  { %p432_p1 = pnand %p431_p0, %p425_p11 }
  0x21   :  { %435 = shalt.err (!%p432_p1)
}
  0x22   :  { %33 = dma.hbm_to_vmem [thread:$0]  %s530_s1, 2048, %s28_s24, [#allocation6], %s465_s19, %s465_s19, %s466_s20  }
  0x23   :  { %458 = dma.done.wait [#allocation3], 2048  }
  0x24   :  { %459 = vsyncadd [#allocation3], 4294965248 }
  0x25   :  { %460 = dma.done.wait [#allocation6], 2048  }
  0x26   :  { %461 = vsyncadd [#allocation6], 4294965248  ;;  %v56_v0 = vld [vmem:[#allocation5] sm:$0xff]  ;;  %v57_v1 = vld [vmem:[#allocation5 + $0x8] sm:$0xff]  ;;  %s468_s1 = smov [#allocation7]  }
  0x27   :  { %v58_v2 = vld [vmem:[#allocation5 + $0x10] sm:$0xff]  ;;  %v339_v3 = vpack.c.bf16 %v57_v1, %v56_v0  ;;  %v59_v4 = vld [vmem:[#allocation5 + $0x18] sm:$0xff]  ;;  %v60_v6 = vld [vmem:[#allocation5 + $0x20] sm:$0xff]  ;;  %s238_s6 = sshll.u32 %s468_s1, 4  ;;  %s239_s6 = int_to_ptr.vmem [resolvable:$true] %s238_s6 }
  0x28   :  { %v343_v5 = vpack.c.bf16 %v59_v4, %v58_v2  ;;  %v61_v7 = vld [vmem:[#allocation5 + $0x28] sm:$0xff]  ;;  %v40_v9 = vld [vmem:[#allocation2] sm:$0xff]  ;;  %v62_v11 = vld [vmem:[#allocation5 + $0x30] sm:$0xff]  ;;  %s436_s7 = scalar_lea.vmem %s239_s6, 2048  ;;  %p441_p3 = scmp.lt.s32.totalorder %s239_s6, %s239_s6 }
  0x29   :  { %340 = vmatprep.subr.bf16.mxu0 %v339_v3  ;;  %371 = vmatprep.subr.bf16.mxu1 %v339_v3  ;;  %v347_v8 = vpack.c.bf16 %v61_v7, %v60_v6  ;;  %v48_v10 = vld [vmem:[#allocation2 + $0x40] sm:$0xff]  ;;  %v63_v12 = vld [vmem:[#allocation5 + $0x38] sm:$0xff]  ;;  %v65_v15 = vld [vmem:[#allocation5 + $0x48] sm:$0xff]  ;;  %p437_p2 = scmp.ne.s32.totalorder %s239_s6, %s436_s7  ;;  %p442_p4 = scmp.lt.s32.totalorder %s436_s7, %s436_s7 }
  0x2a   :  { %342 = vmatpush3.bf16.msra.mxu0 %v339_v3  ;;  %379 = vmatpush3.bf16.msra.mxu1 %v339_v3  ;;  %v351_v13 = vpack.c.bf16 %v63_v12, %v62_v11  ;;  %v64_v14 = vld [vmem:[#allocation5 + $0x40] sm:$0xff]  ;;  %v66_v17 = vld [vmem:[#allocation5 + $0x50] sm:$0xff]  ;;  %v67_v18 = vld [vmem:[#allocation5 + $0x58] sm:$0xff] }
  0x2b   :  { %344 = vmatprep.subr.bf16.mxu0 %v343_v5  ;;  %372 = vmatprep.subr.bf16.mxu1 %v343_v5  ;;  %v355_v16 = vpack.c.bf16 %v65_v15, %v64_v14  ;;  %v359_v19 = vpack.c.bf16 %v67_v18, %v66_v17  ;;  %v68_v20 = vld [vmem:[#allocation5 + $0x60] sm:$0xff]  ;;  %v69_v21 = vld [vmem:[#allocation5 + $0x68] sm:$0xff]  ;;  %v70_v23 = vld [vmem:[#allocation5 + $0x70] sm:$0xff]  ;;  %p443_p5 = por %p442_p4, %p441_p3 }
  0x2c   :  { %315 = vmatprep.mubr.f32.mxu0 %v40_v9  ;;  %327 = vmatprep.mubr.f32.mxu1 %v48_v10  ;;  %v363_v22 = vpack.c.bf16 %v69_v21, %v68_v20  ;;  %v71_v24 = vld [vmem:[#allocation5 + $0x78] sm:$0xff]  ;;  %v41_v26 = vld [vmem:[#allocation2 + $0x8] sm:$0xff]  ;;  %v42_v28 = vld [vmem:[#allocation2 + $0x10] sm:$0xff] }
  0x2d   :  { %v367_v25 = vpack.c.bf16 %v71_v24, %v70_v23  ;;  %v49_v27 = vld [vmem:[#allocation2 + $0x48] sm:$0xff]  ;;  %v50_v29 = vld [vmem:[#allocation2 + $0x50] sm:$0xff]  ;;  %v43_v30 = vld [vmem:[#allocation2 + $0x18] sm:$0xff]  ;;  %p444_p6 = pnand %p443_p5, %p437_p2 }
  0x2e   :  { %346 = vmatpush3.bf16.msra.mxu0 %v343_v5  ;;  %380 = vmatpush3.bf16.msra.mxu1 %v343_v5  ;;  %v51_v31 = vld [vmem:[#allocation2 + $0x58] sm:$0xff]  ;;  %v44_v32 = vld [vmem:[#allocation2 + $0x20] sm:$0xff]  ;;  %v45_v34 = vld [vmem:[#allocation2 + $0x28] sm:$0xff] }
  0x2f   :  { %348 = vmatprep.subr.bf16.mxu0 %v347_v8  ;;  %373 = vmatprep.subr.bf16.mxu1 %v347_v8  ;;  %v52_v33 = vld [vmem:[#allocation2 + $0x60] sm:$0xff]  ;;  %v53_v35 = vld [vmem:[#allocation2 + $0x68] sm:$0xff]  ;;  %v46_v36 = vld [vmem:[#allocation2 + $0x30] sm:$0xff] }
  0x30   :  { %v54_v37 = vld [vmem:[#allocation2 + $0x70] sm:$0xff]  ;;  %v47_v38 = vld [vmem:[#allocation2 + $0x38] sm:$0xff] }
  0x31   :  { %v55_v39 = vld [vmem:[#allocation2 + $0x78] sm:$0xff] }
  0x32   :  { %350 = vmatpush3.bf16.msra.mxu0 %v347_v8  ;;  %381 = vmatpush3.bf16.msra.mxu1 %v347_v8 }
  0x33   :  { %352 = vmatprep.subr.bf16.mxu0 %v351_v13  ;;  %374 = vmatprep.subr.bf16.mxu1 %v351_v13 }
  0x36   :  { %354 = vmatpush3.bf16.msra.mxu0 %v351_v13  ;;  %382 = vmatpush3.bf16.msra.mxu1 %v351_v13 }
  0x37   :  { %356 = vmatprep.subr.bf16.mxu0 %v355_v16  ;;  %375 = vmatprep.subr.bf16.mxu1 %v355_v16 }
  0x3a   :  { %358 = vmatpush3.bf16.msra.mxu0 %v355_v16  ;;  %383 = vmatpush3.bf16.msra.mxu1 %v355_v16 }
  0x3b   :  { %360 = vmatprep.subr.bf16.mxu0 %v359_v19  ;;  %376 = vmatprep.subr.bf16.mxu1 %v359_v19 }
  0x3e   :  { %362 = vmatpush3.bf16.msra.mxu0 %v359_v19  ;;  %384 = vmatpush3.bf16.msra.mxu1 %v359_v19 }
  0x3f   :  { %364 = vmatprep.subr.bf16.mxu0 %v363_v22  ;;  %377 = vmatprep.subr.bf16.mxu1 %v363_v22 }
  0x42   :  { %366 = vmatpush3.bf16.msra.mxu0 %v363_v22  ;;  %385 = vmatpush3.bf16.msra.mxu1 %v363_v22 }
  0x43   :  { %368 = vmatprep.subr.bf16.mxu0 %v367_v25  ;;  %378 = vmatprep.subr.bf16.mxu1 %v367_v25 }
  0x46   :  { %370 = vmatpush3.bf16.msra.mxu0 %v367_v25  ;;  %386 = vmatpush3.bf16.msra.mxu1 %v367_v25 }
  0x49   :  { %316 = vmatmul.mubr.f32.vlgmr.msra.gmra.mrb[0].mxu0 %v41_v26  ;;  %328 = vmatmul.mubr.f32.vlgmr.msra.gmra.mrb[0].mxu1 %v49_v27 }
  0x4a   :  { %318 = vmatprep.mubr.f32.mxu0 %v42_v28  ;;  %330 = vmatprep.mubr.f32.mxu1 %v50_v29 }
  0x4d   :  { %319 = vmatmul.mubr.f32.gmra.mrb[2].mxu0 %v43_v30  ;;  %331 = vmatmul.mubr.f32.gmra.mrb[2].mxu1 %v51_v31 }
  0x4e   :  { %321 = vmatprep.mubr.f32.mxu0 %v44_v32  ;;  %333 = vmatprep.mubr.f32.mxu1 %v52_v33 }
  0x51   :  { %322 = vmatmul.mubr.f32.gmra.mrb[4].mxu0 %v45_v34  ;;  %334 = vmatmul.mubr.f32.gmra.mrb[4].mxu1 %v53_v35 }
  0x52   :  { %324 = vmatprep.mubr.f32.mxu0 %v46_v36  ;;  %336 = vmatprep.mubr.f32.mxu1 %v54_v37 }
  0x55   :  { %325 = vmatmul.mubr.f32.gmra.mrb[6].mxu0 %v47_v38  ;;  %337 = vmatmul.mubr.f32.gmra.mrb[6].mxu1 %v55_v39 }
 0x11c   :  { %v317_v40 = vpop.f32.mrb[0].mxu0  ;;  %v329_v41 = vpop.f32.mrb[0].mxu1 }
 0x11d   :  { %218 = vst [vmem:[#allocation7 + $0x8] sm:$0xff] %v317_v40  ;;  %226 = vst [vmem:[#allocation7 + $0x48] sm:$0xff] %v329_v41  ;;  %v138_v42 = vpop.f32.mrb[1].mxu0  ;;  %v178_v43 = vpop.f32.mrb[1].mxu1 }
 0x11e   :  { %217 = vst [vmem:[#allocation7] sm:$0xff] %v138_v42  ;;  %225 = vst [vmem:[#allocation7 + $0x40] sm:$0xff] %v178_v43 }
 0x120   :  { %v320_v44 = vpop.f32.mrb[2].mxu0  ;;  %v332_v45 = vpop.f32.mrb[2].mxu1 }
 0x121   :  { %220 = vst [vmem:[#allocation7 + $0x18] sm:$0xff] %v320_v44  ;;  %228 = vst [vmem:[#allocation7 + $0x58] sm:$0xff] %v332_v45  ;;  %v148_v46 = vpop.f32.mrb[3].mxu0  ;;  %v188_v47 = vpop.f32.mrb[3].mxu1 }
 0x122   :  { %219 = vst [vmem:[#allocation7 + $0x10] sm:$0xff] %v148_v46  ;;  %227 = vst [vmem:[#allocation7 + $0x50] sm:$0xff] %v188_v47 }
 0x124   :  { %v323_v48 = vpop.f32.mrb[4].mxu0  ;;  %v335_v49 = vpop.f32.mrb[4].mxu1 }
 0x125   :  { %222 = vst [vmem:[#allocation7 + $0x28] sm:$0xff] %v323_v48  ;;  %230 = vst [vmem:[#allocation7 + $0x68] sm:$0xff] %v335_v49  ;;  %v158_v50 = vpop.f32.mrb[5].mxu0  ;;  %v198_v51 = vpop.f32.mrb[5].mxu1 }
 0x126   :  { %221 = vst [vmem:[#allocation7 + $0x20] sm:$0xff] %v158_v50  ;;  %229 = vst [vmem:[#allocation7 + $0x60] sm:$0xff] %v198_v51 }
 0x128   :  { %v326_v52 = vpop.f32.mrb[6].mxu0  ;;  %v338_v53 = vpop.f32.mrb[6].mxu1 }
 0x129   :  { %224 = vst [vmem:[#allocation7 + $0x38] sm:$0xff] %v326_v52  ;;  %232 = vst [vmem:[#allocation7 + $0x78] sm:$0xff] %v338_v53  ;;  %v168_v54 = vpop.f32.mrb[7].mxu0  ;;  %v208_v55 = vpop.f32.mrb[7].mxu1 }
 0x12a   :  { %223 = vst [vmem:[#allocation7 + $0x30] sm:$0xff] %v168_v54  ;;  %231 = vst [vmem:[#allocation7 + $0x70] sm:$0xff] %v208_v55 }
 0x12b   :  { %447 = shalt.err (!%p444_p6)
}
 0x12c   :  { %s448_s10 = scalar_lea.hbm %s531_s2, 2048 }
 0x12d   :  { %p449_p7 = scmp.ne.s32.totalorder %s531_s2, %s448_s10  ;;  %p452_p8 = scmp.lt.u32.totalorder %s448_s10, %s531_s2 }
 0x12f   :  { %p454_p9 = pnand %p452_p8, %p449_p7 }
 0x131   :  { %457 = shalt.err (!%p454_p9)
}
 0x132   :  { %244 = dma.vmem_to_hbm [thread:$0]  %s239_s6, 2048, %s531_s2, [#allocation4], %s465_s19, %s465_s19, %s466_s20  }
 0x133   :  { %462 = dma.done.wait [#allocation4], 2048  }
 0x134   :  { %463 = vsyncadd [#allocation4], 4294965248 }
 0x135   :  { %248 = vsyncpa [#allocation3], 1 }
 0x136   :  { %249 = vsyncpa [#allocation6], 1 }
 0x137   :  { %250 = vsyncpa [#allocation4], 1 }

</bundles_post_ra>
